<compile_context>
chip_gen: v5e
topology: v5e:2x2
jax: 0.10.0
libtpu: 0.0.40
codegen_flags: <defaults>
</compile_context>

<pallas_src>
import functools

import numpy as np
import jax
import jax.numpy as jnp
from jax.experimental import pallas as pl
from jax.experimental.pallas import tpu as pltpu


def _round_up(x, m):
    return (x + m - 1) // m * m


# ----------------------------------------------------------------------------
# Pallas kernels
# ----------------------------------------------------------------------------
@functools.lru_cache(maxsize=None)
def _make_matmul_kernel(has_pre, has_bn, has_res, act):
    """Fused conv-as-matmul:

        A' = relu(A * pre_scale + pre_bias)   (optional folded-BN prologue)
        Y  = A'(bf16) @ B(bf16)               (f32 accumulate, single K step)
        Y  = Y * scale + bias                 (optional folded-BN epilogue)
        Y  = act(Y)                           (relu / sigmoid / none)
        Y  = Y + R                            (optional fused residual add)
    """

    def kernel(*refs):
        it = iter(refs)
        a_ref = next(it)
        b_ref = next(it)
        ps_ref = next(it) if has_pre else None
        pb_ref = next(it) if has_pre else None
        s_ref = next(it) if has_bn else None
        c_ref = next(it) if has_bn else None
        r_ref = next(it) if has_res else None
        o_ref = next(it)

        a = a_ref[...]
        if has_pre:                       # pre-activation BN + ReLU prologue
            a = jnp.maximum(a * ps_ref[...] + pb_ref[...], 0.0)
        y = jnp.dot(a.astype(jnp.bfloat16), b_ref[...],
                    preferred_element_type=jnp.float32)
        if has_bn:                        # folded-BN epilogue
            y = y * s_ref[...] + c_ref[...]
        if act == "relu":
            y = jnp.maximum(y, 0.0)
        elif act == "sigmoid":
            y = 1.0 / (1.0 + jnp.exp(-y))
        if has_res:                       # fused residual add
            y = y + r_ref[...]
        o_ref[...] = y.astype(o_ref.dtype)

    return kernel


def pallas_matmul_fused(a, b, *, pre_scale=None, pre_bias=None,
                        scale=None, bias=None, residual=None, act="none"):
    """act(relu(a*ps+pb) @ b * scale + bias) [+ residual] -> (M, N) f32.

    a: (M, K) f32 activations; b: (K, N) bf16 weights.
    pre_scale/pre_bias: (1, K) folded BN applied to `a` before the matmul.
    scale/bias:         (1, N) folded BN applied after the matmul.
    """
    M, K = a.shape
    Kb, N = b.shape
    assert K == Kb
    has_pre = pre_scale is not None
    has_bn = scale is not None
    has_res = residual is not None

    a = a.astype(jnp.float32)
    b = b.astype(jnp.bfloat16)

    # Whole contraction stays in VMEM as one K step (max K in this net is
    # 2304 -> ~1.2 MiB bf16 weight tile).  Pad K to a sublane-friendly
    # multiple of 8 (only the 5x5x3 stem, K = 75 -> 80, is affected).
    Kp = _round_up(K, 8)
    if Kp != K:
        a = jnp.pad(a, ((0, 0), (0, Kp - K)))
        b = jnp.pad(b, ((0, Kp - K), (0, 0)))
        if has_pre:
            pre_scale = jnp.pad(pre_scale.reshape(1, K), ((0, 0), (0, Kp - K)))
            pre_bias = jnp.pad(pre_bias.reshape(1, K), ((0, 0), (0, Kp - K)))
    if has_pre:
        pre_scale = pre_scale.reshape(1, Kp).astype(jnp.float32)
        pre_bias = pre_bias.reshape(1, Kp).astype(jnp.float32)

    # Lane-dense output: pad N up to >= 128 (no masked partial stores); give
    # wide-N layers >= 2 lane blocks so v7x can use both TensorCores.
    Np = max(_round_up(N, 128), 128)
    if Np >= 1024:
        tn = 512
    elif Np >= 512:
        tn = 256
    else:
        tn = 128
    if Np != N:
        b = jnp.pad(b, ((0, 0), (0, Np - N)))
    if has_bn:
        scale = scale.reshape(1, N).astype(jnp.float32)
        bias = bias.reshape(1, N).astype(jnp.float32)
        if Np != N:
            scale = jnp.pad(scale, ((0, 0), (0, Np - N)))
            bias = jnp.pad(bias, ((0, 0), (0, Np - N)))

    # Big row tiles (few ~0.35 us grid steps); full-extent block for small M.
    tm = M if M <= 512 else 512
    Mp = _round_up(M, tm)
    if Mp != M:
        a = jnp.pad(a, ((0, Mp - M), (0, 0)))
    # Ensure >= 2 parallel blocks for v7x's two TensorCores when possible.
    if (Mp // tm) * (Np // tn) == 1 and tm >= 64 and tm % 16 == 0:
        tm //= 2

    inputs = [a, b]
    in_specs = [pl.BlockSpec((tm, Kp), lambda i, j: (i, 0)),
                pl.BlockSpec((Kp, tn), lambda i, j: (0, j))]
    if has_pre:
        inputs += [pre_scale, pre_bias]
        in_specs += [pl.BlockSpec((1, Kp), lambda i, j: (0, 0)),
                     pl.BlockSpec((1, Kp), lambda i, j: (0, 0))]
    if has_bn:
        inputs += [scale, bias]
        in_specs += [pl.BlockSpec((1, tn), lambda i, j: (0, j)),
                     pl.BlockSpec((1, tn), lambda i, j: (0, j))]
    if has_res:
        r = residual.astype(jnp.float32)
        if Mp != M or Np != N:
            r = jnp.pad(r, ((0, Mp - M), (0, Np - N)))
        inputs.append(r)
        in_specs.append(pl.BlockSpec((tm, tn), lambda i, j: (i, j)))

    out = pl.pallas_call(
        _make_matmul_kernel(has_pre, has_bn, has_res, act),
        out_shape=jax.ShapeDtypeStruct((Mp, Np), jnp.float32),
        grid=(Mp // tm, Np // tn),
        in_specs=in_specs,
        out_specs=pl.BlockSpec((tm, tn), lambda i, j: (i, j)),
        compiler_params=pltpu.CompilerParams(
            dimension_semantics=("parallel", "parallel")),
    )(*inputs)
    if Mp != M or Np != N:
        out = out[:M, :N]
    return out


@functools.lru_cache(maxsize=None)
def _make_affine_kernel(act):
    def kernel(x_ref, s_ref, c_ref, o_ref):
        y = x_ref[...] * s_ref[...] + c_ref[...]
        if act == "relu":
            y = jnp.maximum(y, 0.0)
        elif act == "sigmoid":
            y = 1.0 / (1.0 + jnp.exp(-y))
        o_ref[...] = y
    return kernel


def pallas_affine_act(x2d, scale, bias, act="relu"):
    """Per-channel affine (folded BN) + activation.  x2d: (M, C) f32."""
    M, C = x2d.shape
    scale = scale.reshape(1, C).astype(jnp.float32)
    bias = bias.reshape(1, C).astype(jnp.float32)
    bm = M if M <= 512 else 512
    Mp = _round_up(M, bm)
    if Mp != M:
        x2d = jnp.pad(x2d, ((0, Mp - M), (0, 0)))
    out = pl.pallas_call(
        _make_affine_kernel(act),
        out_shape=jax.ShapeDtypeStruct((Mp, C), jnp.float32),
        grid=(Mp // bm,),
        in_specs=[pl.BlockSpec((bm, C), lambda i: (i, 0)),
                  pl.BlockSpec((1, C), lambda i: (0, 0)),
                  pl.BlockSpec((1, C), lambda i: (0, 0))],
        out_specs=pl.BlockSpec((bm, C), lambda i: (i, 0)),
        compiler_params=pltpu.CompilerParams(
            dimension_semantics=("parallel",)),
    )(x2d, scale, bias)
    if Mp != M:
        out = out[:M]
    return out


# ----------------------------------------------------------------------------
# Layer helpers (everything below is traced inside ONE top-level jit)
# ----------------------------------------------------------------------------
def conv_bn_act(x, w2d, *, pre=None, bn=None, residual=None,
                ksize=1, stride=1, pad=0, act="none"):
    """Conv (im2col + fused Pallas matmul) with optional pre-activation BN
    prologue, folded-BN/act epilogue and fused residual add.

    x: (N, H, W, Cin) NHWC f32;  w2d: (KH*KW*Cin, Cout) bf16.
    """
    N, H, W, C = x.shape
    Cout = w2d.shape[1]
    kh = kw = ksize
    if kh == 1:
        xs = x if stride == 1 else x[:, ::stride, ::stride, :]
        Ho, Wo = xs.shape[1], xs.shape[2]
        a = xs.reshape(N * Ho * Wo, C)
    else:
        assert pre is None  # pre-activation prologue only used with 1x1 convs
        xp = jnp.pad(x, ((0, 0), (pad, pad), (pad, pad), (0, 0)))
        Ho = (H + 2 * pad - kh) // stride + 1
        Wo = (W + 2 * pad - kw) // stride + 1
        cols = []
        for i in range(kh):
            for j in range(kw):
                cols.append(xp[:, i:i + stride * Ho:stride,
                               j:j + stride * Wo:stride, :])
        a = jnp.concatenate(cols, axis=-1).reshape(N * Ho * Wo, kh * kw * C)
    res2d = None if residual is None else residual.reshape(N * Ho * Wo, Cout)
    y = pallas_matmul_fused(
        a, w2d,
        pre_scale=None if pre is None else pre["scale"],
        pre_bias=None if pre is None else pre["bias"],
        scale=None if bn is None else bn["scale"],
        bias=None if bn is None else bn["bias"],
        residual=res2d, act=act)
    return y.reshape(N, Ho, Wo, Cout)


def affine_act_nhwc(x, bn, *, act="relu"):
    N, H, W, C = x.shape
    y = pallas_affine_act(x.reshape(N * H * W, C), bn["scale"], bn["bias"], act)
    return y.reshape(N, H, W, C)


def max_pool(x, *, k, stride, pad):
    N, H, W, C = x.shape
    xp = jnp.pad(x, ((0, 0), (pad, pad), (pad, pad), (0, 0)),
                 constant_values=-jnp.inf)
    Hout = (H + 2 * pad - k) // stride + 1
    Wout = (W + 2 * pad - k) // stride + 1
    vals = []
    for i in range(k):
        for j in range(k):
            vals.append(xp[:, i:i + stride * Hout:stride,
                           j:j + stride * Wout:stride, :])
    return jnp.max(jnp.stack(vals, axis=0), axis=0)


def upsample_bilinear(x, *, out_h, out_w):
    """nn.UpsamplingBilinear2d (align_corners=True) semantics."""
    N, H, W, C = x.shape
    ys = jnp.linspace(0.0, H - 1.0, out_h)
    xs = jnp.linspace(0.0, W - 1.0, out_w)
    y0 = jnp.floor(ys).astype(jnp.int32)
    y1 = jnp.minimum(y0 + 1, H - 1)
    wy = ys - y0.astype(ys.dtype)
    x0 = jnp.floor(xs).astype(jnp.int32)
    x1 = jnp.minimum(x0 + 1, W - 1)
    wx = xs - x0.astype(xs.dtype)
    top = (x[:, y0, :, :] * (1.0 - wy)[None, :, None, None]
           + x[:, y1, :, :] * wy[None, :, None, None])
    out = (top[:, :, x0, :] * (1.0 - wx)[None, None, :, None]
           + top[:, :, x1, :] * wx[None, None, :, None])
    return out


# ----------------------------------------------------------------------------
# Deterministic parameter init (BN folded, conv weights pre-reshaped to bf16)
# ----------------------------------------------------------------------------
class PRNG:
    def __init__(self, seed):
        self._key = jax.random.PRNGKey(seed)

    def next(self):
        self._key, k = jax.random.split(self._key)
        return k


def init_conv(pg, kh, kw, cin, cout):
    fan_in = kh * kw * cin
    w = (jax.random.normal(pg.next(), (kh, kw, cin, cout), jnp.float32)
         / np.sqrt(fan_in))
    return w.reshape(kh * kw * cin, cout).astype(jnp.bfloat16)


def init_bn(pg, c):
    gamma = 1.0 + 0.1 * jax.random.normal(pg.next(), (c,), jnp.float32)
    beta = 0.1 * jax.random.normal(pg.next(), (c,), jnp.float32)
    mean = 0.1 * jax.random.normal(pg.next(), (c,), jnp.float32)
    var = jax.random.uniform(pg.next(), (c,), jnp.float32, 0.5, 1.5)
    scale = gamma / jnp.sqrt(var + 1e-5)
    bias = beta - mean * scale
    return {"scale": scale.reshape(1, c), "bias": bias.reshape(1, c)}


def init_residual_block(pg, cin, cout, stride=1):
    p = {
        "bn1": init_bn(pg, cin),
        "conv1": init_conv(pg, 1, 1, cin, cout // 4),
        "bn2": init_bn(pg, cout // 4),
        "conv2": init_conv(pg, 3, 3, cout // 4, cout // 4),
        "bn3": init_bn(pg, cout // 4),
        "conv3": init_conv(pg, 1, 1, cout // 4, cout),
    }
    if cin != cout or stride != 1:
        p["conv4"] = init_conv(pg, 1, 1, cin, cout)
    return p


def init_mask_blocks(pg, c):
    return {
        "bn_a": init_bn(pg, c),
        "conv_a": init_conv(pg, 1, 1, c, c),
        "bn_b": init_bn(pg, c),
        "conv_b": init_conv(pg, 1, 1, c, c),
    }


def init_attention_common(pg, cin, cout):
    return {
        "first": init_residual_block(pg, cin, cout),
        "trunk": [init_residual_block(pg, cin, cout),
                  init_residual_block(pg, cin, cout)],
        "middle": [init_residual_block(pg, cin, cout),
                   init_residual_block(pg, cin, cout)],
        "mask": init_mask_blocks(pg, cout),
        "last": init_residual_block(pg, cin, cout),
    }


def init_attention_stage1(pg, cin, cout):
    p = init_attention_common(pg, cin, cout)
    p["down1"] = init_residual_block(pg, cin, cout)
    p["skip1"] = init_residual_block(pg, cin, cout)
    p["up1"] = init_residual_block(pg, cin, cout)
    return p


def init_model(seed=1):
    pg = PRNG(seed)
    p = {}
    p["conv1_w"] = init_conv(pg, 5, 5, 3, 32)
    p["conv1_bn"] = init_bn(pg, 32)
    p["rb1"] = init_residual_block(pg, 32, 128)
    p["att1"] = init_attention_stage1(pg, 128, 128)
    p["rb2"] = init_residual_block(pg, 128, 256, 2)
    p["att2"] = init_attention_common(pg, 256, 256)
    p["att2_2"] = init_attention_common(pg, 256, 256)
    p["rb3"] = init_residual_block(pg, 256, 512, 2)
    p["att3"] = init_attention_common(pg, 512, 512)
    p["att3_2"] = init_attention_common(pg, 512, 512)
    p["att3_3"] = init_attention_common(pg, 512, 512)
    p["rb4"] = init_residual_block(pg, 512, 1024)
    p["rb5"] = init_residual_block(pg, 1024, 1024)
    p["rb6"] = init_residual_block(pg, 1024, 1024)
    p["mpool2_bn"] = init_bn(pg, 1024)
    p["fc_w"] = (jax.random.normal(pg.next(), (1024, 10), jnp.float32)
                 / np.sqrt(1024.0))
    p["fc_b"] = 0.1 * jax.random.normal(pg.next(), (10,), jnp.float32)
    return p


# ----------------------------------------------------------------------------
# Module forward passes (pre-activation ResNet, everything fused per conv)
# ----------------------------------------------------------------------------
def residual_block(p, x, *, stride=1):
    # PyTorch: out1 = relu(bn1(x)); conv1/conv4 consume out1.  The BN+ReLU is
    # fused as a prologue into both consumers -> no standalone affine kernel.
    if "conv4" in p:
        residual = conv_bn_act(x, p["conv4"], pre=p["bn1"], ksize=1,
                               stride=stride)
    else:
        residual = x
    t = conv_bn_act(x, p["conv1"], pre=p["bn1"], bn=p["bn2"], ksize=1,
                    act="relu")
    t = conv_bn_act(t, p["conv2"], bn=p["bn3"], ksize=3, stride=stride,
                    pad=1, act="relu")
    # conv3 with the residual add fused into the matmul epilogue
    return conv_bn_act(t, p["conv3"], residual=residual, ksize=1)


def mask_blocks(p, x):
    y = conv_bn_act(x, p["conv_a"], pre=p["bn_a"], bn=p["bn_b"], ksize=1,
                    act="relu")
    return conv_bn_act(y, p["conv_b"], ksize=1, act="sigmoid")


def attention_stage1(p, x, size1=(16, 16), size2=(8, 8)):
    x = residual_block(p["first"], x)
    out_trunk = residual_block(p["trunk"][1], residual_block(p["trunk"][0], x))
    out_mpool1 = max_pool(x, k=3, stride=2, pad=1)
    out_down1 = residual_block(p["down1"], out_mpool1)
    out_skip1 = residual_block(p["skip1"], out_down1)
    out_mpool2 = max_pool(out_down1, k=3, stride=2, pad=1)
    out_middle = residual_block(p["middle"][1],
                                residual_block(p["middle"][0], out_mpool2))
    out_interp = upsample_bilinear(out_middle, out_h=size2[0],
                                   out_w=size2[1]) + out_down1
    out = out_interp + out_skip1
    out_up1 = residual_block(p["up1"], out)
    out_interp2 = upsample_bilinear(out_up1, out_h=size1[0],
                                    out_w=size1[1]) + out_trunk
    out_mask = mask_blocks(p["mask"], out_interp2)
    out = (1.0 + out_mask) * out_trunk
    return residual_block(p["last"], out)


def attention_stage2(p, x, size=(8, 8)):
    x = residual_block(p["first"], x)
    out_trunk = residual_block(p["trunk"][1], residual_block(p["trunk"][0], x))
    out_mpool1 = max_pool(x, k=3, stride=2, pad=1)
    out_middle = residual_block(p["middle"][1],
                                residual_block(p["middle"][0], out_mpool1))
    out_interp = upsample_bilinear(out_middle, out_h=size[0],
                                   out_w=size[1]) + out_trunk
    out_mask = mask_blocks(p["mask"], out_interp)
    out = (1.0 + out_mask) * out_trunk
    return residual_block(p["last"], out)


def attention_stage3(p, x):
    x = residual_block(p["first"], x)
    out_trunk = residual_block(p["trunk"][1], residual_block(p["trunk"][0], x))
    out_middle = residual_block(p["middle"][1],
                                residual_block(p["middle"][0], x))
    out_mask = mask_blocks(p["mask"], out_middle)
    out = (1.0 + out_mask) * out_trunk
    return residual_block(p["last"], out)


def _model_forward(p, x_nchw):
    x = jnp.transpose(x_nchw, (0, 2, 3, 1))                  # NCHW -> NHWC
    out = conv_bn_act(x, p["conv1_w"], bn=p["conv1_bn"], ksize=5, pad=2,
                      act="relu")                            # 32x32x32
    out = max_pool(out, k=2, stride=2, pad=0)                # 16x16x32
    out = residual_block(p["rb1"], out)                      # 16x16x128
    out = attention_stage1(p["att1"], out, (16, 16), (8, 8))
    out = residual_block(p["rb2"], out, stride=2)            # 8x8x256
    out = attention_stage2(p["att2"], out, (8, 8))
    out = attention_stage2(p["att2_2"], out, (8, 8))
    out = residual_block(p["rb3"], out, stride=2)            # 4x4x512
    out = attention_stage3(p["att3"], out)
    out = attention_stage3(p["att3_2"], out)
    out = attention_stage3(p["att3_3"], out)
    out = residual_block(p["rb4"], out)                      # 4x4x1024
    out = residual_block(p["rb5"], out)
    out = residual_block(p["rb6"], out)
    out = affine_act_nhwc(out, p["mpool2_bn"], act="relu")   # mpool2: BN+ReLU
    out = jnp.mean(out, axis=(1, 2))                         # AvgPool2d(4) -> (N, 1024)
    # tiny classifier: plain JAX (a 128-padded Pallas matmul would be ~99% zeros)
    return out @ p["fc_w"] + p["fc_b"][None, :]


# single top-level jit: one dispatch per forward, XLA fuses all glue ops
model_forward = jax.jit(_model_forward)


# ----------------------------------------------------------------------------
if __name__ == "__main__":
    # quick correctness probes of the fused matmul against plain JAX
    ka, kb, kr = jax.random.split(jax.random.PRNGKey(7), 3)
    at = jax.random.normal(ka, (256, 288), jnp.float32)
    bt = jax.random.normal(kb, (288, 64), jnp.float32)
    rt = jax.random.normal(kr, (256, 64), jnp.float32)
    st = jnp.linspace(0.5, 1.5, 64).reshape(1, 64)
    ct = jnp.linspace(-0.1, 0.1, 64).reshape(1, 64)
    got = pallas_matmul_fused(at, bt, scale=st, bias=ct, residual=rt,
                              act="relu")
    want = jnp.maximum(at @ bt * st + ct, 0.0) + rt
    assert bool(jnp.allclose(got, want, rtol=5e-2, atol=5e-1))  # bf16 operands

    at2 = jax.random.normal(ka, (64, 1024), jnp.float32)
    bt2 = jax.random.normal(kb, (1024, 128), jnp.float32)
    ps = jnp.linspace(0.8, 1.2, 1024).reshape(1, 1024)
    pb = jnp.linspace(-0.2, 0.2, 1024).reshape(1, 1024)
    got2 = pallas_matmul_fused(at2, bt2, pre_scale=ps, pre_bias=pb)
    want2 = jnp.maximum(at2 * ps + pb, 0.0) @ bt2
    assert bool(jnp.allclose(got2, want2, rtol=5e-2, atol=1.0))

    params = init_model(seed=1)
    x = jax.random.normal(jax.random.PRNGKey(0), (2, 3, 32, 32), jnp.float32)
    logits = model_forward(params, x)
    logits = jax.block_until_ready(logits)
    assert logits.shape == (2, 10)
    assert bool(jnp.all(jnp.isfinite(logits)))
    print("KERNEL_OK")
</pallas_src>

<mosaic_0001>
module attributes {stable_mosaic.version = 11 : i64} {
  func.func @kernel(%arg0: i32, %arg1: i32, %arg2: memref<128x288xf32, #tpu.memory_space<vmem>>, %arg3: memref<288x128xbf16, #tpu.memory_space<vmem>>, %arg4: memref<1x128xf32, #tpu.memory_space<vmem>>, %arg5: memref<1x128xf32, #tpu.memory_space<vmem>>, %arg6: memref<128x128xf32, #tpu.memory_space<vmem>>, %arg7: memref<128x128xf32, #tpu.memory_space<vmem>>) attributes {dimension_semantics = [#tpu.dimension_semantics<parallel>, #tpu.dimension_semantics<parallel>], iteration_bounds = array<i64: 2, 1>, scalar_prefetch = 0 : i64, scratch_operands = 0 : i64, tpu.core_type = #tpu.core_type<tc>, window_params = [{transform_indices = @transform_0, window_bounds = array<i64: 128, 288>}, {transform_indices = @transform_1, window_bounds = array<i64: 288, 128>}, {transform_indices = @transform_2, window_bounds = array<i64: 1, 128>}, {transform_indices = @transform_3, window_bounds = array<i64: 1, 128>}, {transform_indices = @transform_4, window_bounds = array<i64: 128, 128>}, {transform_indices = @transform_5, window_bounds = array<i64: 128, 128>}]} {
    %c0 = arith.constant 0 : index
    %c0_0 = arith.constant 0 : index
    %0 = vector.load %arg2[%c0, %c0_0] : memref<128x288xf32, #tpu.memory_space<vmem>>, vector<128x288xf32>
    %1 = arith.truncf %0 : vector<128x288xf32> to vector<128x288xbf16>
    %c0_1 = arith.constant 0 : index
    %c0_2 = arith.constant 0 : index
    %2 = vector.load %arg3[%c0_1, %c0_2] : memref<288x128xbf16, #tpu.memory_space<vmem>>, vector<288x128xbf16>
    %cst = arith.constant dense<0.000000e+00> : vector<128x128xf32>
    %3 = tpu.matmul %1, %2, %cst {dimension_numbers = #tpu.dot_dimension_numbers<[1], [0], [0], [1], [0, 0, 1, 1], [], []>} : vector<128x288xbf16>, vector<288x128xbf16>, vector<128x128xf32> -> vector<128x128xf32>
    %c0_3 = arith.constant 0 : index
    %c0_4 = arith.constant 0 : index
    %4 = vector.load %arg4[%c0_3, %c0_4] : memref<1x128xf32, #tpu.memory_space<vmem>>, vector<1x128xf32>
    %5 = vector.broadcast %4 : vector<1x128xf32> to vector<128x128xf32>
    %6 = arith.mulf %3, %5 : vector<128x128xf32>
    %c0_5 = arith.constant 0 : index
    %c0_6 = arith.constant 0 : index
    %7 = vector.load %arg5[%c0_5, %c0_6] : memref<1x128xf32, #tpu.memory_space<vmem>>, vector<1x128xf32>
    %8 = vector.broadcast %7 : vector<1x128xf32> to vector<128x128xf32>
    %9 = arith.addf %6, %8 : vector<128x128xf32>
    %cst_7 = arith.constant 0.000000e+00 : f32
    %10 = vector.broadcast %cst_7 : f32 to vector<128x128xf32>
    %11 = arith.maximumf %9, %10 : vector<128x128xf32>
    %c0_8 = arith.constant 0 : index
    %c0_9 = arith.constant 0 : index
    %12 = vector.load %arg6[%c0_8, %c0_9] : memref<128x128xf32, #tpu.memory_space<vmem>>, vector<128x128xf32>
    %13 = arith.addf %11, %12 : vector<128x128xf32>
    %c0_10 = arith.constant 0 : index
    %c0_11 = arith.constant 0 : index
    %14 = vector.load %arg7[%c0_10, %c0_11] : memref<128x128xf32, #tpu.memory_space<vmem>>, vector<128x128xf32>
    tpu.vector_store %arg7[%c0_10, %c0_11], %13 {strides = array<i32>} : memref<128x128xf32, #tpu.memory_space<vmem>>, vector<128x128xf32>,
    return
  }
  func.func @transform_0(%arg0: i32, %arg1: i32) -> (i32, i32) {
    %c0_i32 = arith.constant 0 : i32
    %c0_i32_0 = arith.constant 0 : i32
    return %arg0, %c0_i32 : i32, i32
  }
  func.func @transform_1(%arg0: i32, %arg1: i32) -> (i32, i32) {
    %c0_i32 = arith.constant 0 : i32
    %c0_i32_0 = arith.constant 0 : i32
    return %c0_i32, %arg1 : i32, i32
  }
  func.func @transform_2(%arg0: i32, %arg1: i32) -> (i32, i32) {
    %c0_i32 = arith.constant 0 : i32
    %c0_i32_0 = arith.constant 0 : i32
    return %c0_i32, %arg1 : i32, i32
  }
  func.func @transform_3(%arg0: i32, %arg1: i32) -> (i32, i32) {
    %c0_i32 = arith.constant 0 : i32
    %c0_i32_0 = arith.constant 0 : i32
    return %c0_i32, %arg1 : i32, i32
  }
  func.func @transform_4(%arg0: i32, %arg1: i32) -> (i32, i32) {
    %c0_i32 = arith.constant 0 : i32
    return %arg0, %arg1 : i32, i32
  }
  func.func @transform_5(%arg0: i32, %arg1: i32) -> (i32, i32) {
    %c0_i32 = arith.constant 0 : i32
    return %arg0, %arg1 : i32, i32
  }
}

</mosaic_0001>

<bundles_post_ra>
// kernel: tpu_custom_call.1
= control target key start
LH: loop header
LB: loop body
LE: loop exit
PB: predicated region body
PF: predicated region fallthrough
CT: control target
= control target key end

     0   :  { %10 = vsyncpa [#allocation3], 0  ;;  %s1576_s0 = inlined_call_operand.vmem [shape: f32[256,288], index: 0, kind: input, shape index: {}]   ;;  %s1577_s1 = inlined_call_operand.vmem [shape: bf16[288,128], index: 1, kind: input, shape index: {}]   ;;  %s1578_s2 = inlined_call_operand.vmem [shape: f32[1,128], index: 2, kind: input, shape index: {}]   ;;  %s1579_s3 = inlined_call_operand.vmem [shape: f32[1,128], index: 3, kind: input, shape index: {}]   ;;  %s1580_s4 = inlined_call_operand.vmem [shape: f32[256,128], index: 4, kind: input, shape index: {}]   ;;  %s1581_s5 = inlined_call_operand.hbm [shape: f32[256,128], index: 5, kind: output, shape index: {}]  }
   0x1   :  { %12 = vsyncpa [#allocation3 + $0x1], 0  ;;  %s1262_s18 = smov 0   ;;  %s1264_s19 = smov 0  }
   0x2   :  { %s1266_s20 = smov 0   ;;  %s1268_s21 = smov 0  }
   0x3   :  { %s1270_s22 = smov 0   ;;  %s1272_s23 = smov 0  }
   0x4 LB: > { %s957_s24 = sadd.s32 4294967295, %s1228_s23   ;;  %s958_s25 = sadd.s32 4294967294, %s1228_s23   ;;  %s1228_s23 = sphi %s1272_s23, %s18_s23   ;;  %s1224_s22 = sphi %s1270_s22, %s1588_s22   ;;  %s1220_s21 = sphi %s1268_s21, %s1587_s21   ;;  %s1216_s20 = sphi %s1266_s20, %s1586_s20   ;;  %s1212_s19 = sphi %s1264_s19, %s1585_s19   ;;  %s1208_s18 = sphi %s1262_s18, %s1584_s18  }
   0x5   : > { %s30_s26 = sadd.s32 1, %s1224_s22  ;;  %s171_s27 = sadd.s32 1, %s1216_s20 }
   0x6   : > { %p32_p0 = scmp.ge.s32.totalorder %s30_s26, 2  ;;  %p181_p1 = scmp.ne.s32.totalorder %s1216_s20, %s1212_s19 }
   0x7   : > { %p182_p2 = scmp.eq.s32.totalorder %s957_s24, 1  ;;  %p187_p3 = scmp.ne.s32.totalorder %s1212_s19, %s1208_s18 }
   0x8   : > { %s1590_s26 = smov (%p32_p0, %s30_s26), 0  ;;  %p188_p5 = scmp.eq.s32.totalorder %s958_s25, 1 }
   0x9   : > { %p1302_p4 = por %p182_p2, %p181_p1  ;;  %s166_s29 = ssub.s32 %s1224_s22, %s1590_s26 }
   0xa   : > { %p964_p6 = scmp.ge.s32.totalorder %s1228_s23, 1  ;;  %p169_p7 = scmp.eq.s32.totalorder %s166_s29, 0 }
   0xb   : > { %p1309_p8 = por %p188_p5, %p187_p3  ;;  %p247_p9 = scmp.lt.s32.totalorder %s1228_s23, 3 }
   0xc   : > { %s1315_s6 = scalar_select %p169_p7, %s1216_s20, %s171_s27  }
   0xd   : > { %p248_p10 = pnand %p964_p6, %p247_p9 }
   0xe   : > { %s966_s13 = sshll.u32 (!%p248_p10), %s1220_s21, 4  ;;  %s1073_s17 = sshll.u32 (!%p248_p10), %s1220_s21, 7 }
   0xf   : > { %251 = sbr.rel (%p248_p10) target bundleno = 296 (0x128), region = 40  ;;  %p295_p11 = scmp.lt.s32.totalorder (!%p248_p10), %s966_s13, 31 }
  0x10   : > { %s1170_s14 = scalar_lea.hbm (!%p248_p10), %s1581_s5, 256 }
  0x14   : > { %v1062_v0 = vld [vmem:[%s1577_s1 + $0x38] sm:$0xff]  ;;  %v1072_v2 = vld [vmem:[%s1577_s1 + $0x88] sm:$0xff]  ;;  %v1061_v3 = vld [vmem:[%s1577_s1 + $0x30] sm:$0xff]  ;;  %s1592_s13 = smov (!%p295_p11, %s966_s13), 31  ;;  %vm538_vm0 = vcmask 261120  }
  0x15   : > { %v1323_v1 = vld [vmem:[%s1577_s1 + $0x78] sm:$0xff]  ;;  %563 = vmatpush.bf16.msra.mxu0 %v1062_v0  ;;  %1074 = vmatpush.bf16.msra.mxu3 %v1062_v0  ;;  %v1069_v4 = vld [vmem:[%s1577_s1 + $0x70] sm:$0xff]  ;;  %v1071_v5 = vld [vmem:[%s1577_s1 + $0x80] sm:$0xff]  ;;  %s1090_s27 = smul.u32 24, %s1592_s13  ;;  %s969_s8 = sshll.u32 %s1592_s13, 3 }
  0x16   : > { %612 = vmatpush.bf16.msra.mxu1 %v1323_v1  ;;  %667 = vmatpush.bf16.msra.mxu2 %v1072_v2  ;;  %v1060_v6 = vld [vmem:[%s1577_s1 + $0x28] sm:$0xff]  ;;  %v1059_v11 = vld [vmem:[%s1577_s1 + $0x20] sm:$0xff]  ;;  %v1058_v13 = vld [vmem:[%s1577_s1 + $0x18] sm:$0xff]  ;;  %s1455_s15 = scalar_lea.vmem %s1580_s4, %s969_s8 }
  0x17   : > { %v1068_v7 = vld [vmem:[%s1577_s1 + $0x68] sm:$0xff]  ;;  %s1351_s12 = scalar_lea.vmem %s1576_s0, %s1090_s27  ;;  %v1067_v12 = vld [vmem:[%s1577_s1 + $0x60] sm:$0xff]  ;;  %v1066_v14 = vld [vmem:[%s1577_s1 + $0x58] sm:$0xff]  ;;  %s827_s27 = scalar_lea.hbm %s1581_s5, %s1073_s17 }
  0x18   : > { %v324_v8 = vld [vmem:[%s1351_s12 + $0x10] sm:$0xff]  ;;  %v327_v9 = vld [vmem:[%s1351_s12 + $0x28] sm:$0xff]  ;;  %v330_v17 = vld [vmem:[%s1351_s12 + $0x40] sm:$0xff]  ;;  %s830_s7 = sshll.u32 %s827_s27, 4  ;;  %s831_s7 = int_to_ptr.hbm [resolvable:$true] %s830_s7 }
  0x19   : > { %564 = vmatpush.bf16.msra.mxu0 %v1061_v3  ;;  %1075 = vmatpush.bf16.msra.mxu3 %v1061_v3  ;;  %v372_v10 = vpack.c.bf16 %v327_v9, %v324_v8  ;;  %v1057_v15 = vld [vmem:[%s1577_s1 + $0x10] sm:$0xff]  ;;  %v333_v18 = vld [vmem:[%s1351_s12 + $0x58] sm:$0xff]  ;;  %v1056_v19 = vld [vmem:[%s1577_s1 + $0x8] sm:$0xff]  ;;  %s1164_s8 = sshra.s32 %s831_s7, 4  ;;  %s1165_s8 = int_to_ptr.hbm [resolvable:$true] %s1164_s8 }
  0x1a   : > { %613 = vmatpush.bf16.msra.mxu1 %v1069_v4  ;;  %668 = vmatpush.bf16.msra.mxu2 %v1071_v5  ;;  %v1065_v16 = vld [vmem:[%s1577_s1 + $0x50] sm:$0xff]  ;;  %v1064_v20 = vld [vmem:[%s1577_s1 + $0x48] sm:$0xff]  ;;  %v375_v21 = vpack.c.bf16 %v333_v18, %v330_v17  ;;  %v1055_v22 = vld [vmem:[%s1577_s1] sm:$0xff]  ;;  %s1166_s9 = scalar_lea.hbm %s1165_s8, 128  ;;  %p1171_p1 = scmp.lt.s32.totalorder %s1165_s8, %s1581_s5 }
  0x1b   : > { %v322_v23 = vld [vmem:[%s1351_s12] sm:$0xff]  ;;  %v325_v24 = vld [vmem:[%s1351_s12 + $0x18] sm:$0xff]  ;;  %v323_v28 = vld [vmem:[%s1351_s12 + $0x8] sm:$0xff]  ;;  %p1167_p12 = scmp.ne.s32.totalorder %s1165_s8, %s1166_s9  ;;  %p1172_p2 = scmp.lt.s32.totalorder %s1170_s14, %s1166_s9 }
  0x1c   : > { %v358_v25 = vld [vmem:[%s1351_s12 + $0x120] sm:$0xff]  ;;  %v361_v26 = vld [vmem:[%s1351_s12 + $0x138] sm:$0xff]  ;;  %v370_v30 = vpack.c.bf16 %v325_v24, %v322_v23  ;;  %v336_v33 = vld [vmem:[%s1351_s12 + $0x70] sm:$0xff] }
  0x1d   : > { %565 = vmatpush.bf16.msra.mxu0 %v1060_v6  ;;  %1076 = vmatpush.bf16.msra.mxu3 %v1060_v6  ;;  %v1063_v27 = vld [vmem:[%s1577_s1 + $0x40] sm:$0xff]  ;;  %v388_v31 = vpack.c.bf16 %v361_v26, %v358_v25  ;;  %v339_v34 = vld [vmem:[%s1351_s12 + $0x88] sm:$0xff]  ;;  %v328_v36 = vld [vmem:[%s1351_s12 + $0x30] sm:$0xff]  ;;  %p1168_p13 = pnand %p1167_p12, %p1302_p4  ;;  %p1173_p3 = por %p1172_p2, %p1171_p1 }
  0x1e   : > { %614 = vmatpush.bf16.msra.mxu1 %v1068_v7  ;;  %1042 = vmatmul.msk.bf16.vlgmr.msra.gmra.mxu2 %vm538_vm0, %v372_v10  ;;  %v326_v29 = vld [vmem:[%s1351_s12 + $0x20] sm:$0xff]  ;;  %v378_v35 = vpack.c.bf16 %v339_v34, %v336_v33  ;;  %v331_v37 = vld [vmem:[%s1351_s12 + $0x48] sm:$0xff]  ;;  %v364_v38 = vld [vmem:[%s1351_s12 + $0x150] sm:$0xff] }
  0x1f   : > { %v371_v32 = vpack.c.bf16 %v326_v29, %v323_v28  ;;  %v367_v39 = vld [vmem:[%s1351_s12 + $0x168] sm:$0xff]  ;;  %v329_v40 = vld [vmem:[%s1351_s12 + $0x38] sm:$0xff]  ;;  %v332_v41 = vld [vmem:[%s1351_s12 + $0x50] sm:$0xff]  ;;  %v373_v42 = vpack.c.bf16 %v331_v37, %v328_v36  ;;  %p1169_p0 = pneg %p1168_p13 }
  0x20   : > { %v391_v43 = vpack.c.bf16 %v367_v39, %v364_v38  ;;  %v374_v44 = vpack.c.bf16 %v332_v41, %v329_v40  ;;  %v342_v45 = vld [vmem:[%s1351_s12 + $0xa0] sm:$0xff]  ;;  %v345_v46 = vld [vmem:[%s1351_s12 + $0xb8] sm:$0xff]  ;;  %v359_v50 = vld [vmem:[%s1351_s12 + $0x128] sm:$0xff] }
  0x21   : > { %566 = vmatpush.bf16.msra.mxu0 %v1059_v11  ;;  %1077 = vmatpush.bf16.msra.mxu3 %v1059_v11  ;;  %v381_v47 = vpack.c.bf16 %v345_v46, %v342_v45  ;;  %v334_v48 = vld [vmem:[%s1351_s12 + $0x60] sm:$0xff]  ;;  %v337_v49 = vld [vmem:[%s1351_s12 + $0x78] sm:$0xff]  ;;  %v335_v52 = vld [vmem:[%s1351_s12 + $0x68] sm:$0xff]  ;;  %p1174_p5 = pnand %p1173_p3, %p1169_p0 }
  0x22   : > { %615 = vmatpush.bf16.msra.mxu1 %v1067_v12  ;;  %v362_v51 = vld [vmem:[%s1351_s12 + $0x140] sm:$0xff]  ;;  %v376_v54 = vpack.c.bf16 %v337_v49, %v334_v48  ;;  %v348_v57 = vld [vmem:[%s1351_s12 + $0xd0] sm:$0xff]  ;;  %v351_v58 = vld [vmem:[%s1351_s12 + $0xe8] sm:$0xff] }
  0x23   : > { %v338_v53 = vld [vmem:[%s1351_s12 + $0x80] sm:$0xff]  ;;  %v389_v55 = vpack.c.bf16 %v362_v51, %v359_v50  ;;  %v384_v59 = vpack.c.bf16 %v351_v58, %v348_v57  ;;  %v340_v60 = vld [vmem:[%s1351_s12 + $0x90] sm:$0xff]  ;;  %v343_v61 = vld [vmem:[%s1351_s12 + $0xa8] sm:$0xff] }
  0x24   : > { %v377_v56 = vpack.c.bf16 %v338_v53, %v335_v52  ;;  %v365_v62 = vld [vmem:[%s1351_s12 + $0x158] sm:$0xff]  ;;  %v368_v63 = vld [vmem:[%s1351_s12 + $0x170] sm:$0xff]  ;;  %v379_v2 = vpack.c.bf16 %v343_v61, %v340_v60  ;;  %v354_v5 = vld [vmem:[%s1351_s12 + $0x100] sm:$0xff] }
  0x25   : > { %567 = vmatpush.bf16.msra.mxu0 %v1058_v13  ;;  %1078 = vmatpush.bf16.msra.mxu3 %v1058_v13  ;;  %v341_v0 = vld [vmem:[%s1351_s12 + $0x98] sm:$0xff]  ;;  %v392_v3 = vpack.c.bf16 %v368_v63, %v365_v62  ;;  %v346_v8 = vld [vmem:[%s1351_s12 + $0xc0] sm:$0xff]  ;;  %v347_v10 = vld [vmem:[%s1351_s12 + $0xc8] sm:$0xff] }
  0x26   : > { %616 = vmatpush.bf16.msra.mxu1 %v1066_v14  ;;  %v357_v6 = vld [vmem:[%s1351_s12 + $0x118] sm:$0xff]  ;;  %v350_v11 = vld [vmem:[%s1351_s12 + $0xe0] sm:$0xff]  ;;  %v352_v17 = vld [vmem:[%s1351_s12 + $0xf0] sm:$0xff] }
  0x27   : > { %v349_v9 = vld [vmem:[%s1351_s12 + $0xd8] sm:$0xff]  ;;  %v383_v13 = vpack.c.bf16 %v350_v11, %v347_v10  ;;  %v355_v18 = vld [vmem:[%s1351_s12 + $0x108] sm:$0xff]  ;;  %v366_v23 = vld [vmem:[%s1351_s12 + $0x160] sm:$0xff] }
  0x28   : > { %v369_v24 = vld [vmem:[%s1351_s12 + $0x178] sm:$0xff]  ;;  %v1449_v34 = vld [vmem:[%s1579_s3] ss:$0 sm:$0xff]  ;;  %v767_v49 = vld [vmem:[%s1455_s15 + $0x8] sm:$0xff] }
  0x29   : > { %568 = vmatpush.bf16.msra.mxu0 %v1057_v15  ;;  %1079 = vmatpush.bf16.msra.mxu3 %v1057_v15  ;;  %v363_v15 = vld [vmem:[%s1351_s12 + $0x148] sm:$0xff]  ;;  %v393_v25 = vpack.c.bf16 %v369_v24, %v366_v23  ;;  %v766_v39 = vld [vmem:[%s1455_s15] sm:$0xff] }
  0x2a   : > { %617 = vmatpush.bf16.msra.mxu1 %v1065_v16 }
  0x2d   : > { %569 = vmatpush.bf16.msra.mxu0 %v1056_v19  ;;  %1080 = vmatpush.bf16.msra.mxu3 %v1056_v19  ;;  %v353_v19 = vld [vmem:[%s1351_s12 + $0xf8] sm:$0xff] }
  0x2e   : > { %618 = vmatpush.bf16.msra.mxu1 %v1064_v20  ;;  %1043 = vmatmul.msk.bf16.gmra.mxu2 %vm538_vm0, %v375_v21  ;;  %v385_v21 = vpack.c.bf16 %v355_v18, %v352_v17  ;;  %v770_v17 = vld [vmem:[%s1455_s15 + $0x20] sm:$0xff] }
  0x31   : > { %570 = vmatpush.bf16.msra.mxu0 %v1055_v22  ;;  %1081 = vmatpush.bf16.msra.mxu3 %v1055_v22 }
  0x32   : > { %619 = vmatpush.bf16.msra.mxu1 %v1063_v27 }
  0x34   : > { %571 = vmatmul.bf16.vlgmr.msra.gmra.mxu0 %v370_v30  ;;  %601 = vmatmul.bf16.vlgmr.msra.gmra.mxu3 %v388_v31 }
  0x35   : > { %1082 = vmatpush.bf16.msrb.mxu3 %v1323_v1  ;;  %620 = vmatmul.bf16.vlgmr.msra.gmra.mxu1 %v371_v32  ;;  %v344_v1 = vld [vmem:[%s1351_s12 + $0xb0] sm:$0xff]  ;;  %v1443_v32 = vld [vmem:[%s1578_s2] ss:$0 sm:$0xff] }
  0x39   : > { %1083 = vmatpush.bf16.msrb.mxu3 %v1069_v4  ;;  %v380_v4 = vpack.c.bf16 %v344_v1, %v341_v0 }
  0x3d   : > { %1084 = vmatpush.bf16.msrb.mxu3 %v1068_v7  ;;  %v387_v7 = vpack.c.bf16 %v357_v6, %v354_v5  ;;  %v769_v6 = vld [vmem:[%s1455_s15 + $0x18] sm:$0xff] }
  0x3e   : > { %1044 = vmatmul.msk.bf16.gmra.mxu2 %vm538_vm0, %v378_v35 }
  0x41   : > { %1085 = vmatpush.bf16.msrb.mxu3 %v1067_v12  ;;  %v382_v12 = vpack.c.bf16 %v349_v9, %v346_v8 }
  0x44   : > { %576 = vmatmul.bf16.gmra.mxu0 %v373_v42  ;;  %606 = vmatmul.bf16.gmra.mxu3 %v391_v43 }
  0x45   : > { %1086 = vmatpush.bf16.msrb.mxu3 %v1066_v14  ;;  %625 = vmatmul.bf16.gmra.mxu1 %v374_v44  ;;  %v360_v14 = vld [vmem:[%s1351_s12 + $0x130] sm:$0xff] }
  0x49   : > { %1087 = vmatpush.bf16.msrb.mxu3 %v1065_v16  ;;  %v390_v16 = vpack.c.bf16 %v363_v15, %v360_v14 }
  0x4d   : > { %1088 = vmatpush.bf16.msrb.mxu3 %v1064_v20  ;;  %v356_v20 = vld [vmem:[%s1351_s12 + $0x110] sm:$0xff]  ;;  %s291_s12 = sand.u32 1, %s1212_s19  }
  0x4e   : > { %1045 = vmatmul.msk.bf16.gmra.mxu2 %vm538_vm0, %v381_v47  ;;  %v386_v22 = vpack.c.bf16 %v356_v20, %v353_v19  ;;  %s965_s16 = sshll.u32 %s291_s12, 7  ;;  %s815_s21 = scalar_lea.sflag [#allocation3], %s291_s12 }
  0x4f   : > { %s1462_s13 = scalar_lea.vmem [#allocation2], %s965_s16 }
  0x50   : > { %s828_s29 = sshll.u32 %s1462_s13, 4  ;;  %s829_s29 = int_to_ptr.vmem [resolvable:$true] %s828_s29 }
  0x51   : > { %1089 = vmatpush.bf16.msrb.mxu3 %v1063_v27 }
  0x54   : > { %581 = vmatmul.bf16.gmra.mxu0 %v376_v54  ;;  %650 = vmatmul.bf16.vlgmr.msrb.gmra.mxu3 %v389_v55 }
  0x55   : > { %630 = vmatmul.bf16.gmra.mxu1 %v377_v56 }
  0x5e   : > { %1046 = vmatmul.msk.bf16.gmra.mxu2 %vm538_vm0, %v384_v59  ;;  %v768_v59 = vld [vmem:[%s1455_s15 + $0x10] sm:$0xff] }
  0x64   : > { %586 = vmatmul.bf16.gmra.mxu0 %v379_v2  ;;  %655 = vmatmul.bf16.gmra.mxu3 %v392_v3 }
  0x65   : > { %635 = vmatmul.bf16.gmra.mxu1 %v380_v4 }
  0x6e   : > { %1047 = vmatmul.msk.bf16.gmra.mxu2 %vm538_vm0, %v387_v7 }
  0x74   : > { %591 = vmatmul.bf16.gmra.mxu0 %v382_v12 }
  0x75   : > { %640 = vmatmul.bf16.gmra.mxu1 %v383_v13 }
  0x7e   : > { %1048 = vmatmul.msk.bf16.gmra.mxu2 %vm538_vm0, %v390_v16 }
  0x84   : > { %596 = vmatmul.bf16.gmra.mxu0 %v385_v21 }
  0x85   : > { %645 = vmatmul.bf16.gmra.mxu1 %v386_v22 }
  0x8e   : > { %1049 = vmatmul.msk.bf16.gmra.mxu2 %vm538_vm0, %v393_v25 }
  0xa1   : > { %v670_v26 = vpop.f32.mrf.mxu2 }
  0xa9   : > { %v672_v27 = vpop.f32.mrf.mxu2 }
  0xb1   : > { %v675_v28 = vpop.f32.mrf.mxu2  ;;  %v572_v29 = vpop.f32.mrf.mxu0 }
  0xb2   : > { %v621_v30 = vpop.f32.mrf.mxu1 }
  0xb3   : > { %v622_v31 = vadd.f32 %v621_v30, %v572_v29 }
  0xb5   : > { %v671_v33 = vadd.f32 %v670_v26, %v622_v31 }
  0xb7   : > { %v714_v35 = vmul.f32 %v1443_v32, %v671_v33  ;;  %v1472_v1 = vpop.f32.mrf.mxu3 }
  0xb9   : > { %v734_v36 = vadd.f32 %v1449_v34, %v714_v35  ;;  %v677_v37 = vpop.f32.mrf.mxu2  ;;  %v574_v38 = vpop.f32.mrf.mxu0 }
  0xba   : > { %v623_v40 = vpop.f32.mrf.mxu1 }
  0xbb   : > { %v750_v41 = vmax.f32 %v734_v36, 0.0  ;;  %v624_v42 = vadd.f32 %v623_v40, %v574_v38  ;;  %v772_v40 = vld [vmem:[%s1455_s15 + $0x30] sm:$0xff] }
  0xbd   : > { %v782_v43 = vadd.f32 %v766_v39, %v750_v41  ;;  %v673_v44 = vadd.f32 %v672_v27, %v624_v42 }
  0xbf   : > { %798 = vst [vmem:[%s1462_s13] sm:$0xff] %v782_v43  ;;  %v715_v45 = vmul.f32 %v1443_v32, %v673_v44  ;;  %v1480_v13 = vpop.f32.mrf.mxu3 }
  0xc1   : > { %v735_v46 = vadd.f32 %v1449_v34, %v715_v45  ;;  %v680_v47 = vpop.f32.mrf.mxu2  ;;  %v577_v48 = vpop.f32.mrf.mxu0 }
  0xc2   : > { %v626_v50 = vpop.f32.mrf.mxu1 }
  0xc3   : > { %v751_v51 = vmax.f32 %v735_v46, 0.0  ;;  %v627_v52 = vadd.f32 %v626_v50, %v577_v48 }
  0xc5   : > { %v783_v53 = vadd.f32 %v767_v49, %v751_v51  ;;  %v676_v54 = vadd.f32 %v675_v28, %v627_v52  ;;  %v771_v28 = vld [vmem:[%s1455_s15 + $0x28] sm:$0xff]  ;;  %v773_v51 = vld [vmem:[%s1455_s15 + $0x38] sm:$0xff] }
  0xc7   : > { %799 = vst [vmem:[%s1462_s13 + $0x8] sm:$0xff] %v783_v53  ;;  %v716_v55 = vmul.f32 %v1443_v32, %v676_v54  ;;  %v1487_v27 = vpop.f32.mrf.mxu3 }
  0xc9   : > { %v736_v56 = vadd.f32 %v1449_v34, %v716_v55  ;;  %v682_v57 = vpop.f32.mrf.mxu2  ;;  %v579_v58 = vpop.f32.mrf.mxu0 }
  0xca   : > { %v628_v60 = vpop.f32.mrf.mxu1 }
  0xcb   : > { %v752_v61 = vmax.f32 %v736_v56, 0.0  ;;  %v629_v62 = vadd.f32 %v628_v60, %v579_v58 }
  0xcd   : > { %v784_v63 = vadd.f32 %v768_v59, %v752_v61  ;;  %v678_v0 = vadd.f32 %v677_v37, %v629_v62  ;;  %v774_v62 = vld [vmem:[%s1455_s15 + $0x40] sm:$0xff] }
  0xcf   : > { %800 = vst [vmem:[%s1462_s13 + $0x10] sm:$0xff] %v784_v63  ;;  %v717_v2 = vmul.f32 %v1443_v32, %v678_v0  ;;  %v1494_v44 = vpop.f32.mrf.mxu3 }
  0xd1   : > { %v737_v3 = vadd.f32 %v1449_v34, %v717_v2  ;;  %v685_v4 = vpop.f32.mrf.mxu2  ;;  %v582_v5 = vpop.f32.mrf.mxu0 }
  0xd2   : > { %v631_v7 = vpop.f32.mrf.mxu1 }
  0xd3   : > { %v753_v8 = vmax.f32 %v737_v3, 0.0  ;;  %v632_v9 = vadd.f32 %v631_v7, %v582_v5 }
  0xd5   : > { %v785_v10 = vadd.f32 %v769_v6, %v753_v8  ;;  %v681_v11 = vadd.f32 %v680_v47, %v632_v9 }
  0xd7   : > { %801 = vst [vmem:[%s1462_s13 + $0x18] sm:$0xff] %v785_v10  ;;  %v718_v12 = vmul.f32 %v1443_v32, %v681_v11  ;;  %v775_v11 = vld [vmem:[%s1455_s15 + $0x48] sm:$0xff] }
  0xd9   : > { %v738_v14 = vadd.f32 %v1449_v34, %v718_v12  ;;  %v687_v15 = vpop.f32.mrf.mxu2  ;;  %v584_v16 = vpop.f32.mrf.mxu0 }
  0xda   : > { %v633_v18 = vpop.f32.mrf.mxu1 }
  0xdb   : > { %v754_v19 = vmax.f32 %v738_v14, 0.0  ;;  %v634_v20 = vadd.f32 %v633_v18, %v584_v16 }
  0xdd   : > { %v786_v21 = vadd.f32 %v770_v17, %v754_v19  ;;  %v683_v22 = vadd.f32 %v682_v57, %v634_v20  ;;  %v651_v57 = vpop.f32.mrf.mxu3 }
  0xde   : > { %v652_v6 = vadd.f32 %v651_v57, %v1472_v1  ;;  %v778_v1 = vld [vmem:[%s1455_s15 + $0x60] sm:$0xff] }
  0xdf   : > { %802 = vst [vmem:[%s1462_s13 + $0x20] sm:$0xff] %v786_v21  ;;  %v719_v23 = vmul.f32 %v1443_v32, %v683_v22 }
  0xe1   : > { %v739_v24 = vadd.f32 %v1449_v34, %v719_v23  ;;  %v690_v25 = vpop.f32.mrf.mxu2  ;;  %v587_v26 = vpop.f32.mrf.mxu0 }
  0xe2   : > { %v636_v29 = vpop.f32.mrf.mxu1 }
  0xe3   : > { %v755_v30 = vmax.f32 %v739_v24, 0.0  ;;  %v637_v31 = vadd.f32 %v636_v29, %v587_v26  ;;  %v776_v29 = vld [vmem:[%s1455_s15 + $0x50] sm:$0xff] }
  0xe5   : > { %v787_v33 = vadd.f32 %v771_v28, %v755_v30  ;;  %v686_v35 = vadd.f32 %v685_v4, %v637_v31  ;;  %v653_v7 = vpop.f32.mrf.mxu3 }
  0xe6   : > { %v654_v22 = vadd.f32 %v653_v7, %v1480_v13 }
  0xe7   : > { %803 = vst [vmem:[%s1462_s13 + $0x28] sm:$0xff] %v787_v33  ;;  %v720_v36 = vmul.f32 %v1443_v32, %v686_v35 }
  0xe9   : > { %v740_v37 = vadd.f32 %v1449_v34, %v720_v36  ;;  %v692_v38 = vpop.f32.mrf.mxu2  ;;  %v589_v39 = vpop.f32.mrf.mxu0 }
  0xea   : > { %v638_v41 = vpop.f32.mrf.mxu1 }
  0xeb   : > { %v756_v42 = vmax.f32 %v740_v37, 0.0  ;;  %v639_v43 = vadd.f32 %v638_v41, %v589_v39 }
  0xed   : > { %v788_v45 = vadd.f32 %v772_v40, %v756_v42  ;;  %v688_v46 = vadd.f32 %v687_v15, %v639_v43  ;;  %v656_v33 = vpop.f32.mrf.mxu3  ;;  %v779_v40 = vld [vmem:[%s1455_s15 + $0x68] sm:$0xff] }
  0xee   : > { %v657_v42 = vadd.f32 %v656_v33, %v1487_v27  ;;  %v780_v27 = vld [vmem:[%s1455_s15 + $0x70] sm:$0xff] }
  0xef   : > { %804 = vst [vmem:[%s1462_s13 + $0x30] sm:$0xff] %v788_v45  ;;  %v721_v47 = vmul.f32 %v1443_v32, %v688_v46 }
  0xf1   : > { %v741_v48 = vadd.f32 %v1449_v34, %v721_v47  ;;  %v695_v49 = vpop.f32.mrf.mxu2  ;;  %v592_v50 = vpop.f32.mrf.mxu0 }
  0xf2   : > { %v641_v52 = vpop.f32.mrf.mxu1 }
  0xf3   : > { %v757_v53 = vmax.f32 %v741_v48, 0.0  ;;  %v642_v54 = vadd.f32 %v641_v52, %v592_v50  ;;  %v777_v48 = vld [vmem:[%s1455_s15 + $0x58] sm:$0xff] }
  0xf5   : > { %v789_v55 = vadd.f32 %v773_v51, %v757_v53  ;;  %v691_v56 = vadd.f32 %v690_v25, %v642_v54  ;;  %v658_v52 = vpop.f32.mrf.mxu3 }
  0xf7   : > { %805 = vst [vmem:[%s1462_s13 + $0x38] sm:$0xff] %v789_v55  ;;  %v722_v58 = vmul.f32 %v1443_v32, %v691_v56  ;;  %v659_v55 = vadd.f32 %v658_v52, %v1494_v44  ;;  %v781_v44 = vld [vmem:[%s1455_s15 + $0x78] sm:$0xff] }
  0xf9   : > { %v742_v59 = vadd.f32 %v1449_v34, %v722_v58  ;;  %v697_v60 = vpop.f32.mrf.mxu2  ;;  %v594_v61 = vpop.f32.mrf.mxu0 }
  0xfa   : > { %v643_v63 = vpop.f32.mrf.mxu1 }
  0xfb   : > { %v758_v0 = vmax.f32 %v742_v59, 0.0  ;;  %v644_v2 = vadd.f32 %v643_v63, %v594_v61 }
  0xfd   : > { %v790_v3 = vadd.f32 %v774_v62, %v758_v0  ;;  %v693_v4 = vadd.f32 %v692_v38, %v644_v2 }
  0xff   : > { %806 = vst [vmem:[%s1462_s13 + $0x40] sm:$0xff] %v790_v3  ;;  %v723_v5 = vmul.f32 %v1443_v32, %v693_v4 }
 0x101   : > { %v743_v8 = vadd.f32 %v1449_v34, %v723_v5  ;;  %v700_v9 = vpop.f32.mrf.mxu2  ;;  %v597_v10 = vpop.f32.mrf.mxu0 }
 0x102   : > { %v701_v12 = vadd.f32 %v700_v9, %v652_v6  ;;  %v646_v14 = vpop.f32.mrf.mxu1 }
 0x103   : > { %v759_v15 = vmax.f32 %v743_v8, 0.0  ;;  %v647_v16 = vadd.f32 %v646_v14, %v597_v10 }
 0x104   : > { %v726_v17 = vmul.f32 %v1443_v32, %v701_v12 }
 0x105   : > { %v791_v18 = vadd.f32 %v775_v11, %v759_v15  ;;  %v696_v19 = vadd.f32 %v695_v49, %v647_v16 }
 0x106   : > { %v746_v20 = vadd.f32 %v1449_v34, %v726_v17 }
 0x107   : > { %807 = vst [vmem:[%s1462_s13 + $0x48] sm:$0xff] %v791_v18  ;;  %v724_v21 = vmul.f32 %v1443_v32, %v696_v19 }
 0x108   : > { %v762_v23 = vmax.f32 %v746_v20, 0.0 }
 0x109   : > { %v744_v24 = vadd.f32 %v1449_v34, %v724_v21  ;;  %v702_v25 = vpop.f32.mrf.mxu2  ;;  %v599_v26 = vpop.f32.mrf.mxu0 }
 0x10a   : > { %v794_v28 = vadd.f32 %v778_v1, %v762_v23  ;;  %v703_v30 = vadd.f32 %v702_v25, %v654_v22  ;;  %v648_v31 = vpop.f32.mrf.mxu1 }
 0x10b   : > { %v760_v35 = vmax.f32 %v744_v24, 0.0  ;;  %v649_v36 = vadd.f32 %v648_v31, %v599_v26 }
 0x10c   : > { %810 = vst [vmem:[%s1462_s13 + $0x60] sm:$0xff] %v794_v28  ;;  %v727_v37 = vmul.f32 %v1443_v32, %v703_v30 }
 0x10d   : > { %v792_v13 = vadd.f32 %v776_v29, %v760_v35  ;;  %v698_v38 = vadd.f32 %v697_v60, %v649_v36 }
 0x10e   : > { %v747_v39 = vadd.f32 %v1449_v34, %v727_v37 }
 0x10f   : > { %808 = vst [vmem:[%s1462_s13 + $0x50] sm:$0xff] %v792_v13  ;;  %v725_v41 = vmul.f32 %v1443_v32, %v698_v38 }
 0x110   : > { %v763_v43 = vmax.f32 %v747_v39, 0.0 }
 0x111   : > { %v745_v45 = vadd.f32 %v1449_v34, %v725_v41  ;;  %v705_v46 = vpop.f32.mrf.mxu2 }
 0x112   : > { %v795_v47 = vadd.f32 %v779_v40, %v763_v43  ;;  %v706_v49 = vadd.f32 %v705_v46, %v657_v42 }
 0x113   : > { %v761_v50 = vmax.f32 %v745_v45, 0.0 }
 0x114   : > { %811 = vst [vmem:[%s1462_s13 + $0x68] sm:$0xff] %v795_v47  ;;  %v728_v51 = vmul.f32 %v1443_v32, %v706_v49 }
 0x115   : > { %v793_v53 = vadd.f32 %v777_v48, %v761_v50 }
 0x116   : > { %v748_v54 = vadd.f32 %v1449_v34, %v728_v51 }
 0x117   : > { %809 = vst [vmem:[%s1462_s13 + $0x58] sm:$0xff] %v793_v53 }
 0x118   : > { %v764_v56 = vmax.f32 %v748_v54, 0.0 }
 0x119   : > { %v707_v57 = vpop.f32.mrf.mxu2 }
 0x11a   : > { %v796_v58 = vadd.f32 %v780_v27, %v764_v56  ;;  %v708_v59 = vadd.f32 %v707_v57, %v659_v55 }
 0x11c   : > { %812 = vst [vmem:[%s1462_s13 + $0x70] sm:$0xff] %v796_v58  ;;  %v729_v60 = vmul.f32 %v1443_v32, %v708_v59 }
 0x11e   : > { %v749_v61 = vadd.f32 %v1449_v34, %v729_v60 }
 0x120   : > { %v765_v62 = vmax.f32 %v749_v61, 0.0 }
 0x122   : > { %v797_v63 = vadd.f32 %v781_v44, %v765_v62 }
 0x124   : > { %813 = vst [vmem:[%s1462_s13 + $0x78] sm:$0xff] %v797_v63 }
 0x125   : > { %1177 = shalt.err (!%p1174_p5)
}
 0x126   : > { %s1230_s12 = smov 128   ;;  %s1231_s13 = smov 8  }
 0x127   : > { %1091 = dma.vmem_to_hbm [thread:$0]  (%p1302_p4), %s829_s29, 2048, %s831_s7, %s815_s21, %s1230_s12, %s1230_s12, %s1231_s13  }
 0x128 PF: > { %p1097_p6 = scmp.ge.s32.totalorder %s1228_s23, 2  ;;  %s845_s17 = sand.u32 1, %s1208_s18  }
 0x129   : > { %s846_s24 = scalar_lea.sflag [#allocation3], %s845_s17 }
 0x12a   : > { %p1094_p7 = pnand %p1097_p6, %p1309_p8 }
 0x12c   : > { %p1095_p9 = pneg %p1094_p7 }
 0x12e   : > { %1203 = dma.done.wait (%p1095_p9), %s846_s24, 2048  }
 0x12f   : > { %1205 = vsyncadd (%p1095_p9), %s846_s24, 4294965248  ;;  %s18_s23 = sadd.s32 1, %s1228_s23   ;;  %s1584_s18 = smov %s1212_s19 }
 0x130   : > { %p15_p10 = scmp.ge.s32.totalorder %s18_s23, 4   ;;  %s1585_s19 = smov %s1216_s20 }
 0x131   : > { %s1586_s20 = smov %s1315_s6  ;;  %s1587_s21 = smov %s1224_s22 }
 0x132   : > { %s1588_s22 = smov %s1590_s26  ;;  %17 = sbr.rel (!%p15_p10) target bundleno = 4 (0x4), region = 87 }
 0x137   :  { %852 = vsyncpa [#allocation3], 1 }
 0x138   :  { %854 = vsyncpa [#allocation3 + $0x1], 1 }

</bundles_post_ra>
